<compile_context>
chip_gen: v5e
topology: v5e:2x2
jax: 0.10.0
libtpu: 0.0.40
codegen_flags: <defaults>
</compile_context>

<pallas_src>
import functools
import math

import jax
import jax.numpy as jnp
from jax.experimental import pallas as pl
from jax.experimental.pallas import tpu as pltpu


def _vmem_budget_bytes():
    try:
        info = pltpu.get_tpu_info()
        return int(getattr(info, "vmem_capacity_bytes", 64 << 20))
    except Exception:                              # non-TPU / older-jax fallback
        return 64 << 20


def _conv_bn_elu_kernel(x_ref, w_ref, pbs_ref, o_ref, col_ref, *,
                        batch, c_in, ksize, dilation, pad, l_in, l_out):
    # x_ref:   (B, C_in, L)         unpadded input; channels=sublanes, length=lanes
    # w_ref:   (C_out_p, K*C_in)    packed conv weight; column index = t*C_in + c
    # pbs_ref: (C_out_p, 3)         [conv bias | BN scale | BN shift]
    # o_ref:   (B, C_out, L_final)  final output (true channel count)
    # col_ref: (K*C_in, B*L_out)    VMEM im2col scratch (its zeros = ConstantPad1d)
    c_out = o_ref.shape[1]
    l_final = o_ref.shape[2]

    # ConstantPad1d realized here: boundary columns of the im2col scratch stay
    # zero; only the valid x window of each tap is copied in (static bounds).
    col_ref[...] = jnp.zeros_like(col_ref)
    for b in range(batch):                         # tiny static unrolls (B=2, K=9)
        x_b = x_ref[b]                             # (C_in, L)
        for t in range(ksize):
            lo = max(0, pad - t * dilation)                # first valid out column
            hi = min(l_out, l_in + pad - t * dilation)     # one past last valid
            if hi > lo:
                col_ref[t * c_in:(t + 1) * c_in,
                        b * l_out + lo:b * l_out + hi] = (
                    x_b[:, lo + t * dilation - pad:hi + t * dilation - pad])

    # Single MXU dot: taps folded into the contraction (K*C_in), batches folded
    # into the lane dim (N = B*L_out); f32 accumulation.
    y = jnp.dot(w_ref[...], col_ref[...], preferred_element_type=jnp.float32)
    y = y + pbs_ref[:, 0:1]                                        # conv bias
    # ELU(alpha=1): y if y > 0 else exp(y) - 1 (exp arg clamped on the
    # unselected branch); one EUP pass over the whole (C_out_p, B*L_out) slab.
    y = jnp.where(y > 0, y, jnp.exp(jnp.minimum(y, 0.0)) - 1.0)
    y = y * pbs_ref[:, 1:2] + pbs_ref[:, 2:3]                      # eval-mode BN

    for b in range(batch):
        z = y[:c_out, b * l_out:(b + 1) * l_out]
        if l_final > l_out:                        # in-kernel ceil_pad zero column
            z = jnp.concatenate(
                [z, jnp.zeros((c_out, l_final - l_out), z.dtype)], axis=1)
        o_ref[b] = z.astype(o_ref.dtype)


def prepare_conv_bn_elu_params(weight, bias, gamma, beta, running_mean,
                               running_var, *, eps=1e-5):
    """One-time constant prep (module init), hoisted out of the forward path.

    weight: (C_out, C_in, K); bias/gamma/beta/running_*: (C_out,). Returns
      w_packed:   (C_out_p, K*C_in)  column index = t*C_in + c
      pbs_packed: (C_out_p, 3)       columns = [conv bias, BN scale, BN shift]
    """
    C_out, C_in, K = weight.shape
    C_out_p = ((C_out + 7) // 8) * 8               # pad channels to sublane granule
    w_packed = jnp.transpose(weight, (0, 2, 1)).reshape(C_out, K * C_in)
    w_packed = jnp.pad(w_packed, ((0, C_out_p - C_out), (0, 0))).astype(jnp.float32)
    scale = gamma / jnp.sqrt(running_var + eps)    # fold eval-mode BatchNorm
    shift = beta - running_mean * scale
    pbs = jnp.stack([bias, scale, shift], axis=1)
    pbs_packed = jnp.pad(pbs, ((0, C_out_p - C_out), (0, 0))).astype(jnp.float32)
    return w_packed, pbs_packed


def conv_bn_elu_forward(x, packed_params, *, out_channels, kernel_size,
                        dilation=1, ceil_pad=False):
    """Apply-only forward; all constant prep lives in prepare_conv_bn_elu_params."""
    w_packed, pbs_packed = packed_params
    B, C_in, L = x.shape
    C_out_p, KC = w_packed.shape
    K = kernel_size
    assert KC == K * C_in, (KC, K, C_in)
    pad = (K + (K - 1) * (dilation - 1) - 1) // 2
    L_out = L + 2 * pad - dilation * (K - 1)
    L_final = L_out + 1 if (ceil_pad and L_out % 2 == 1) else L_out

    # Whole-problem-resident design; guard the VMEM footprint.
    itemsize = 4
    working_set = itemsize * (2 * B * C_in * L                  # x (dbl-buffered)
                              + 2 * C_out_p * (KC + 3)          # weight + scalars
                              + 2 * B * out_channels * L_final  # output
                              + KC * B * L_out)                 # im2col scratch
    if working_set > _vmem_budget_bytes() // 2:
        # TODO(synk): add an L-tiled path (halo of dilation*(K-1) lanes) for
        # realistic usleep sequence lengths that do not fit VMEM.
        raise NotImplementedError(
            "ConvBNELU pallas kernel: working set exceeds VMEM; L-tiling TBD")

    kernel = functools.partial(
        _conv_bn_elu_kernel, batch=B, c_in=C_in, ksize=K, dilation=dilation,
        pad=pad, l_in=L, l_out=L_out)

    return pl.pallas_call(
        kernel,
        out_shape=jax.ShapeDtypeStruct((B, out_channels, L_final), x.dtype),
        grid=(1,),                                 # whole slab resident in VMEM
        in_specs=[
            pl.BlockSpec((B, C_in, L), lambda i: (0, 0, 0)),
            pl.BlockSpec((C_out_p, KC), lambda i: (0, 0)),
            pl.BlockSpec((C_out_p, 3), lambda i: (0, 0)),
        ],
        out_specs=pl.BlockSpec((B, out_channels, L_final), lambda i: (0, 0, 0)),
        scratch_shapes=[pltpu.VMEM((KC, B * L_out), jnp.float32)],
        compiler_params=pltpu.CompilerParams(
            dimension_semantics=("arbitrary",)),
        cost_estimate=pl.CostEstimate(
            flops=2 * C_out_p * KC * B * L_out,
            transcendentals=C_out_p * B * L_out,
            bytes_accessed=itemsize * (B * C_in * L + C_out_p * (KC + 3)
                                       + B * out_channels * L_final)),
    )(x, w_packed, pbs_packed)


def init_params(key, in_channels, out_channels=6, kernel_size=9):
    # Matches nn.init.xavier_uniform_ on Conv1d weight (out, in, k):
    #   fan_in = in*k, fan_out = out*k, bound = sqrt(6 / (fan_in + fan_out))
    fan_in = in_channels * kernel_size
    fan_out = out_channels * kernel_size
    bound = math.sqrt(6.0 / (fan_in + fan_out))
    weight = jax.random.uniform(
        key, (out_channels, in_channels, kernel_size),
        minval=-bound, maxval=bound, dtype=jnp.float32)
    bias = jnp.zeros((out_channels,), dtype=jnp.float32)      # nn.init.zeros_
    return weight, bias


def reference(x, weight, bias, gamma, beta, running_mean, running_var,
              *, dilation=1, eps=1e-5):
    # Pure-JAX reference: pad -> dilated conv -> +bias -> ELU -> eval BatchNorm.
    C_out, _, K = weight.shape
    pad = (K + (K - 1) * (dilation - 1) - 1) // 2
    xp = jnp.pad(x, ((0, 0), (0, 0), (pad, pad)))
    L_out = x.shape[2] + 2 * pad - dilation * (K - 1)
    conv = jnp.broadcast_to(bias[None, :, None], (x.shape[0], C_out, L_out))
    for t in range(K):
        conv = conv + jnp.einsum(
            "oc,bcl->bol", weight[:, :, t],
            xp[:, :, t * dilation: t * dilation + L_out],
            precision=jax.lax.Precision.HIGHEST)
    elu = jnp.where(conv > 0, conv, jnp.exp(jnp.minimum(conv, 0.0)) - 1.0)
    scale = gamma / jnp.sqrt(running_var + eps)
    shift = beta - running_mean * scale
    return elu * scale[None, :, None] + shift[None, :, None]


if __name__ == "__main__":
    B, C_in, L = 2, 16, 128
    out_channels, kernel_size, dilation = 6, 9, 1
    eps = 1e-5

    key = jax.random.PRNGKey(0)
    k_w, k_x, k_g, k_b, k_m, k_v = jax.random.split(key, 6)

    weight, bias = init_params(k_w, C_in, out_channels, kernel_size)
    x = jax.random.normal(k_x, (B, C_in, L), dtype=jnp.float32)

    # BatchNorm1d parameters (eval mode); randomized so the BN fold is exercised.
    gamma = jax.random.uniform(k_g, (out_channels,), minval=0.5, maxval=1.5,
                               dtype=jnp.float32)
    beta = 0.1 * jax.random.normal(k_b, (out_channels,), dtype=jnp.float32)
    running_mean = 0.1 * jax.random.normal(k_m, (out_channels,), dtype=jnp.float32)
    running_var = jax.random.uniform(k_v, (out_channels,), minval=0.5, maxval=1.5,
                                     dtype=jnp.float32)

    # Constant prep runs once (module init), not on the per-call forward path.
    params = prepare_conv_bn_elu_params(weight, bias, gamma, beta,
                                        running_mean, running_var, eps=eps)
    params = jax.block_until_ready(params)

    out = conv_bn_elu_forward(x, params, out_channels=out_channels,
                              kernel_size=kernel_size, dilation=dilation,
                              ceil_pad=True)
    out = jax.block_until_ready(out)

    ref = reference(x, weight, bias, gamma, beta, running_mean, running_var,
                    dilation=dilation, eps=eps)

    assert out.shape == (B, out_channels, L), out.shape
    assert out.shape == ref.shape, (out.shape, ref.shape)
    max_err = float(jnp.max(jnp.abs(out - ref)))
    assert jnp.allclose(out, ref, atol=1e-4, rtol=1e-4), max_err

    print("KERNEL_OK")
</pallas_src>

<mosaic_0001>
module attributes {stable_mosaic.version = 11 : i64} {
  func.func @_conv_bn_elu_kernel(%arg0: i32, %arg1: memref<2x16x128xf32, #tpu.memory_space<vmem>>, %arg2: memref<8x144xf32, #tpu.memory_space<vmem>>, %arg3: memref<8x3xf32, #tpu.memory_space<vmem>>, %arg4: memref<2x6x128xf32, #tpu.memory_space<vmem>>, %arg5: memref<144x256xf32, #tpu.memory_space<vmem>>) attributes {dimension_semantics = [#tpu.dimension_semantics<arbitrary>], iteration_bounds = array<i64: 1>, scalar_prefetch = 0 : i64, scratch_operands = 1 : i64, tpu.core_type = #tpu.core_type<tc>, window_params = [{pipeline_mode = #tpu.pipeline_mode<synchronous>, transform_indices = @transform_0, window_bounds = array<i64: 2, 16, 128>}, {pipeline_mode = #tpu.pipeline_mode<synchronous>, transform_indices = @transform_1, window_bounds = array<i64: 8, 144>}, {pipeline_mode = #tpu.pipeline_mode<synchronous>, transform_indices = @transform_2, window_bounds = array<i64: 8, 3>}, {pipeline_mode = #tpu.pipeline_mode<synchronous>, transform_indices = @transform_3, window_bounds = array<i64: 2, 6, 128>}]} {
    %cst = arith.constant 0.000000e+00 : f32
    %0 = vector.broadcast %cst : f32 to vector<144x256xf32>
    %c0 = arith.constant 0 : index
    %c0_0 = arith.constant 0 : index
    %1 = vector.load %arg5[%c0, %c0_0] : memref<144x256xf32, #tpu.memory_space<vmem>>, vector<144x256xf32>
    tpu.vector_store %arg5[%c0, %c0_0], %0 {strides = array<i32>} : memref<144x256xf32, #tpu.memory_space<vmem>>, vector<144x256xf32>,
    %c0_1 = arith.constant 0 : index
    %c0_2 = arith.constant 0 : index
    %c0_3 = arith.constant 0 : index
    %2 = vector.load %arg1[%c0_1, %c0_2, %c0_3] : memref<2x16x128xf32, #tpu.memory_space<vmem>>, vector<1x16x128xf32>
    %3 = vector.shape_cast %2 : vector<1x16x128xf32> to vector<16x128xf32>
    %4 = vector.extract_strided_slice %3 {offsets = [0, 0], sizes = [16, 124], strides = [1, 1]} : vector<16x128xf32> to vector<16x124xf32>
    %c0_4 = arith.constant 0 : index
    %c4 = arith.constant 4 : index
    %5 = vector.load %arg5[%c0_4, %c4] : memref<144x256xf32, #tpu.memory_space<vmem>>, vector<16x124xf32>
    tpu.vector_store %arg5[%c0_4, %c4], %4 {strides = array<i32>} : memref<144x256xf32, #tpu.memory_space<vmem>>, vector<16x124xf32>,
    %6 = vector.extract_strided_slice %3 {offsets = [0, 0], sizes = [16, 125], strides = [1, 1]} : vector<16x128xf32> to vector<16x125xf32>
    %c16 = arith.constant 16 : index
    %c3 = arith.constant 3 : index
    %7 = vector.load %arg5[%c16, %c3] : memref<144x256xf32, #tpu.memory_space<vmem>>, vector<16x125xf32>
    tpu.vector_store %arg5[%c16, %c3], %6 {strides = array<i32>} : memref<144x256xf32, #tpu.memory_space<vmem>>, vector<16x125xf32>,
    %8 = vector.extract_strided_slice %3 {offsets = [0, 0], sizes = [16, 126], strides = [1, 1]} : vector<16x128xf32> to vector<16x126xf32>
    %c32 = arith.constant 32 : index
    %c2 = arith.constant 2 : index
    %9 = vector.load %arg5[%c32, %c2] : memref<144x256xf32, #tpu.memory_space<vmem>>, vector<16x126xf32>
    tpu.vector_store %arg5[%c32, %c2], %8 {strides = array<i32>} : memref<144x256xf32, #tpu.memory_space<vmem>>, vector<16x126xf32>,
    %10 = vector.extract_strided_slice %3 {offsets = [0, 0], sizes = [16, 127], strides = [1, 1]} : vector<16x128xf32> to vector<16x127xf32>
    %c48 = arith.constant 48 : index
    %c1 = arith.constant 1 : index
    %11 = vector.load %arg5[%c48, %c1] : memref<144x256xf32, #tpu.memory_space<vmem>>, vector<16x127xf32>
    tpu.vector_store %arg5[%c48, %c1], %10 {strides = array<i32>} : memref<144x256xf32, #tpu.memory_space<vmem>>, vector<16x127xf32>,
    %c64 = arith.constant 64 : index
    %c0_5 = arith.constant 0 : index
    %12 = vector.load %arg5[%c64, %c0_5] : memref<144x256xf32, #tpu.memory_space<vmem>>, vector<16x128xf32>
    tpu.vector_store %arg5[%c64, %c0_5], %3 {strides = array<i32>} : memref<144x256xf32, #tpu.memory_space<vmem>>, vector<16x128xf32>,
    %13 = vector.extract_strided_slice %3 {offsets = [0, 1], sizes = [16, 127], strides = [1, 1]} : vector<16x128xf32> to vector<16x127xf32>
    %c80 = arith.constant 80 : index
    %c0_6 = arith.constant 0 : index
    %14 = vector.load %arg5[%c80, %c0_6] : memref<144x256xf32, #tpu.memory_space<vmem>>, vector<16x127xf32>
    tpu.vector_store %arg5[%c80, %c0_6], %13 {strides = array<i32>} : memref<144x256xf32, #tpu.memory_space<vmem>>, vector<16x127xf32>,
    %15 = vector.extract_strided_slice %3 {offsets = [0, 2], sizes = [16, 126], strides = [1, 1]} : vector<16x128xf32> to vector<16x126xf32>
    %c96 = arith.constant 96 : index
    %c0_7 = arith.constant 0 : index
    %16 = vector.load %arg5[%c96, %c0_7] : memref<144x256xf32, #tpu.memory_space<vmem>>, vector<16x126xf32>
    tpu.vector_store %arg5[%c96, %c0_7], %15 {strides = array<i32>} : memref<144x256xf32, #tpu.memory_space<vmem>>, vector<16x126xf32>,
    %17 = vector.extract_strided_slice %3 {offsets = [0, 3], sizes = [16, 125], strides = [1, 1]} : vector<16x128xf32> to vector<16x125xf32>
    %c112 = arith.constant 112 : index
    %c0_8 = arith.constant 0 : index
    %18 = vector.load %arg5[%c112, %c0_8] : memref<144x256xf32, #tpu.memory_space<vmem>>, vector<16x125xf32>
    tpu.vector_store %arg5[%c112, %c0_8], %17 {strides = array<i32>} : memref<144x256xf32, #tpu.memory_space<vmem>>, vector<16x125xf32>,
    %19 = vector.extract_strided_slice %3 {offsets = [0, 4], sizes = [16, 124], strides = [1, 1]} : vector<16x128xf32> to vector<16x124xf32>
    %c128 = arith.constant 128 : index
    %c0_9 = arith.constant 0 : index
    %20 = vector.load %arg5[%c128, %c0_9] : memref<144x256xf32, #tpu.memory_space<vmem>>, vector<16x124xf32>
    tpu.vector_store %arg5[%c128, %c0_9], %19 {strides = array<i32>} : memref<144x256xf32, #tpu.memory_space<vmem>>, vector<16x124xf32>,
    %c1_10 = arith.constant 1 : index
    %c0_11 = arith.constant 0 : index
    %c0_12 = arith.constant 0 : index
    %21 = vector.load %arg1[%c1_10, %c0_11, %c0_12] : memref<2x16x128xf32, #tpu.memory_space<vmem>>, vector<1x16x128xf32>
    %22 = vector.shape_cast %21 : vector<1x16x128xf32> to vector<16x128xf32>
    %23 = vector.extract_strided_slice %22 {offsets = [0, 0], sizes = [16, 124], strides = [1, 1]} : vector<16x128xf32> to vector<16x124xf32>
    %c0_13 = arith.constant 0 : index
    %c132 = arith.constant 132 : index
    %24 = vector.load %arg5[%c0_13, %c132] : memref<144x256xf32, #tpu.memory_space<vmem>>, vector<16x124xf32>
    tpu.vector_store %arg5[%c0_13, %c132], %23 {strides = array<i32>} : memref<144x256xf32, #tpu.memory_space<vmem>>, vector<16x124xf32>,
    %25 = vector.extract_strided_slice %22 {offsets = [0, 0], sizes = [16, 125], strides = [1, 1]} : vector<16x128xf32> to vector<16x125xf32>
    %c16_14 = arith.constant 16 : index
    %c131 = arith.constant 131 : index
    %26 = vector.load %arg5[%c16_14, %c131] : memref<144x256xf32, #tpu.memory_space<vmem>>, vector<16x125xf32>
    tpu.vector_store %arg5[%c16_14, %c131], %25 {strides = array<i32>} : memref<144x256xf32, #tpu.memory_space<vmem>>, vector<16x125xf32>,
    %27 = vector.extract_strided_slice %22 {offsets = [0, 0], sizes = [16, 126], strides = [1, 1]} : vector<16x128xf32> to vector<16x126xf32>
    %c32_15 = arith.constant 32 : index
    %c130 = arith.constant 130 : index
    %28 = vector.load %arg5[%c32_15, %c130] : memref<144x256xf32, #tpu.memory_space<vmem>>, vector<16x126xf32>
    tpu.vector_store %arg5[%c32_15, %c130], %27 {strides = array<i32>} : memref<144x256xf32, #tpu.memory_space<vmem>>, vector<16x126xf32>,
    %29 = vector.extract_strided_slice %22 {offsets = [0, 0], sizes = [16, 127], strides = [1, 1]} : vector<16x128xf32> to vector<16x127xf32>
    %c48_16 = arith.constant 48 : index
    %c129 = arith.constant 129 : index
    %30 = vector.load %arg5[%c48_16, %c129] : memref<144x256xf32, #tpu.memory_space<vmem>>, vector<16x127xf32>
    tpu.vector_store %arg5[%c48_16, %c129], %29 {strides = array<i32>} : memref<144x256xf32, #tpu.memory_space<vmem>>, vector<16x127xf32>,
    %c64_17 = arith.constant 64 : index
    %c128_18 = arith.constant 128 : index
    %31 = vector.load %arg5[%c64_17, %c128_18] : memref<144x256xf32, #tpu.memory_space<vmem>>, vector<16x128xf32>
    tpu.vector_store %arg5[%c64_17, %c128_18], %22 {strides = array<i32>} : memref<144x256xf32, #tpu.memory_space<vmem>>, vector<16x128xf32>,
    %32 = vector.extract_strided_slice %22 {offsets = [0, 1], sizes = [16, 127], strides = [1, 1]} : vector<16x128xf32> to vector<16x127xf32>
    %c80_19 = arith.constant 80 : index
    %c128_20 = arith.constant 128 : index
    %33 = vector.load %arg5[%c80_19, %c128_20] : memref<144x256xf32, #tpu.memory_space<vmem>>, vector<16x127xf32>
    tpu.vector_store %arg5[%c80_19, %c128_20], %32 {strides = array<i32>} : memref<144x256xf32, #tpu.memory_space<vmem>>, vector<16x127xf32>,
    %34 = vector.extract_strided_slice %22 {offsets = [0, 2], sizes = [16, 126], strides = [1, 1]} : vector<16x128xf32> to vector<16x126xf32>
    %c96_21 = arith.constant 96 : index
    %c128_22 = arith.constant 128 : index
    %35 = vector.load %arg5[%c96_21, %c128_22] : memref<144x256xf32, #tpu.memory_space<vmem>>, vector<16x126xf32>
    tpu.vector_store %arg5[%c96_21, %c128_22], %34 {strides = array<i32>} : memref<144x256xf32, #tpu.memory_space<vmem>>, vector<16x126xf32>,
    %36 = vector.extract_strided_slice %22 {offsets = [0, 3], sizes = [16, 125], strides = [1, 1]} : vector<16x128xf32> to vector<16x125xf32>
    %c112_23 = arith.constant 112 : index
    %c128_24 = arith.constant 128 : index
    %37 = vector.load %arg5[%c112_23, %c128_24] : memref<144x256xf32, #tpu.memory_space<vmem>>, vector<16x125xf32>
    tpu.vector_store %arg5[%c112_23, %c128_24], %36 {strides = array<i32>} : memref<144x256xf32, #tpu.memory_space<vmem>>, vector<16x125xf32>,
    %38 = vector.extract_strided_slice %22 {offsets = [0, 4], sizes = [16, 124], strides = [1, 1]} : vector<16x128xf32> to vector<16x124xf32>
    %c128_25 = arith.constant 128 : index
    %c128_26 = arith.constant 128 : index
    %39 = vector.load %arg5[%c128_25, %c128_26] : memref<144x256xf32, #tpu.memory_space<vmem>>, vector<16x124xf32>
    tpu.vector_store %arg5[%c128_25, %c128_26], %38 {strides = array<i32>} : memref<144x256xf32, #tpu.memory_space<vmem>>, vector<16x124xf32>,
    %c0_27 = arith.constant 0 : index
    %c0_28 = arith.constant 0 : index
    %40 = vector.load %arg2[%c0_27, %c0_28] : memref<8x144xf32, #tpu.memory_space<vmem>>, vector<8x144xf32>
    %c0_29 = arith.constant 0 : index
    %c0_30 = arith.constant 0 : index
    %41 = vector.load %arg5[%c0_29, %c0_30] : memref<144x256xf32, #tpu.memory_space<vmem>>, vector<144x256xf32>
    %cst_31 = arith.constant dense<0.000000e+00> : vector<8x256xf32>
    %42 = tpu.matmul %40, %41, %cst_31 {dimension_numbers = #tpu.dot_dimension_numbers<[1], [0], [0], [1], [0, 0, 1, 1], [], []>} : vector<8x144xf32>, vector<144x256xf32>, vector<8x256xf32> -> vector<8x256xf32>
    %c0_32 = arith.constant 0 : index
    %c0_33 = arith.constant 0 : index
    %43 = vector.load %arg3[%c0_32, %c0_33] : memref<8x3xf32, #tpu.memory_space<vmem>>, vector<8x1xf32>
    %44 = vector.broadcast %43 : vector<8x1xf32> to vector<8x256xf32>
    %45 = arith.addf %42, %44 : vector<8x256xf32>
    %cst_34 = arith.constant 0.000000e+00 : f32
    %46 = vector.broadcast %cst_34 : f32 to vector<8x256xf32>
    %47 = arith.cmpf ogt, %45, %46 : vector<8x256xf32>
    %cst_35 = arith.constant 0.000000e+00 : f32
    %48 = vector.broadcast %cst_35 : f32 to vector<8x256xf32>
    %49 = arith.minimumf %45, %48 : vector<8x256xf32>
    %50 = math.exp %49 : vector<8x256xf32>
    %cst_36 = arith.constant 1.000000e+00 : f32
    %51 = vector.broadcast %cst_36 : f32 to vector<8x256xf32>
    %52 = arith.subf %50, %51 : vector<8x256xf32>
    %53 = arith.select %47, %45, %52 : vector<8x256xi1>, vector<8x256xf32>
    %c0_37 = arith.constant 0 : index
    %c1_38 = arith.constant 1 : index
    %54 = vector.load %arg3[%c0_37, %c1_38] : memref<8x3xf32, #tpu.memory_space<vmem>>, vector<8x1xf32>
    %55 = vector.broadcast %54 : vector<8x1xf32> to vector<8x256xf32>
    %56 = arith.mulf %53, %55 : vector<8x256xf32>
    %c0_39 = arith.constant 0 : index
    %c2_40 = arith.constant 2 : index
    %57 = vector.load %arg3[%c0_39, %c2_40] : memref<8x3xf32, #tpu.memory_space<vmem>>, vector<8x1xf32>
    %58 = vector.broadcast %57 : vector<8x1xf32> to vector<8x256xf32>
    %59 = arith.addf %56, %58 : vector<8x256xf32>
    %60 = vector.extract_strided_slice %59 {offsets = [0, 0], sizes = [6, 128], strides = [1, 1]} : vector<8x256xf32> to vector<6x128xf32>
    %c0_41 = arith.constant 0 : index
    %c0_42 = arith.constant 0 : index
    %c0_43 = arith.constant 0 : index
    %61 = vector.load %arg4[%c0_41, %c0_42, %c0_43] : memref<2x6x128xf32, #tpu.memory_space<vmem>>, vector<1x6x128xf32>
    %62 = vector.shape_cast %61 : vector<1x6x128xf32> to vector<6x128xf32>
    %63 = vector.shape_cast %60 : vector<6x128xf32> to vector<1x6x128xf32>
    tpu.vector_store %arg4[%c0_41, %c0_42, %c0_43], %63 {strides = array<i32>} : memref<2x6x128xf32, #tpu.memory_space<vmem>>, vector<1x6x128xf32>,
    %64 = vector.extract_strided_slice %59 {offsets = [0, 128], sizes = [6, 128], strides = [1, 1]} : vector<8x256xf32> to vector<6x128xf32>
    %c1_44 = arith.constant 1 : index
    %c0_45 = arith.constant 0 : index
    %c0_46 = arith.constant 0 : index
    %65 = vector.load %arg4[%c1_44, %c0_45, %c0_46] : memref<2x6x128xf32, #tpu.memory_space<vmem>>, vector<1x6x128xf32>
    %66 = vector.shape_cast %65 : vector<1x6x128xf32> to vector<6x128xf32>
    %67 = vector.shape_cast %64 : vector<6x128xf32> to vector<1x6x128xf32>
    tpu.vector_store %arg4[%c1_44, %c0_45, %c0_46], %67 {strides = array<i32>} : memref<2x6x128xf32, #tpu.memory_space<vmem>>, vector<1x6x128xf32>,
    return
  }
  func.func @transform_0(%arg0: i32) -> (i32, i32, i32) {
    %c0_i32 = arith.constant 0 : i32
    %c0_i32_0 = arith.constant 0 : i32
    %c0_i32_1 = arith.constant 0 : i32
    %c0_i32_2 = arith.constant 0 : i32
    return %c0_i32, %c0_i32_0, %c0_i32_1 : i32, i32, i32
  }
  func.func @transform_1(%arg0: i32) -> (i32, i32) {
    %c0_i32 = arith.constant 0 : i32
    %c0_i32_0 = arith.constant 0 : i32
    %c0_i32_1 = arith.constant 0 : i32
    return %c0_i32, %c0_i32_0 : i32, i32
  }
  func.func @transform_2(%arg0: i32) -> (i32, i32) {
    %c0_i32 = arith.constant 0 : i32
    %c0_i32_0 = arith.constant 0 : i32
    %c0_i32_1 = arith.constant 0 : i32
    return %c0_i32, %c0_i32_0 : i32, i32
  }
  func.func @transform_3(%arg0: i32) -> (i32, i32, i32) {
    %c0_i32 = arith.constant 0 : i32
    %c0_i32_0 = arith.constant 0 : i32
    %c0_i32_1 = arith.constant 0 : i32
    %c0_i32_2 = arith.constant 0 : i32
    return %c0_i32, %c0_i32_0, %c0_i32_1 : i32, i32, i32
  }
}

</mosaic_0001>

<bundles_post_ra>
// kernel: tpu_custom_call.1
= control target key start
LH: loop header
LB: loop body
LE: loop exit
PB: predicated region body
PF: predicated region fallthrough
CT: control target
= control target key end

     0   :  { %8 = vsyncpa [#allocation4], 0  ;;  %s600_s0 = inlined_call_operand.hbm [shape: f32[2,16,128], index: 0, kind: input, shape index: {}]   ;;  %s601_s1 = inlined_call_operand.hbm [shape: f32[8,144], index: 1, kind: input, shape index: {}]   ;;  %s602_s2 = inlined_call_operand.vmem [shape: f32[8,3], index: 2, kind: input, shape index: {}]   ;;  %s603_s3 = inlined_call_operand.vmem [shape: f32[2,6,128], index: 3, kind: output, shape index: {}]  }
   0x1   :  { %s14_s14 = sshll.u32 %s600_s0, 4  ;;  %s15_s14 = int_to_ptr.hbm [resolvable:$true] %s14_s14 }
   0x2   :  { %9 = vsyncpa [#allocation6], 0  ;;  %s471_s15 = smov [#allocation3]   ;;  %s28_s19 = sshll.u32 %s601_s1, 4  ;;  %s29_s19 = int_to_ptr.hbm [resolvable:$true] %s28_s19 }
   0x3   :  { %s16_s16 = sshll.u32 %s471_s15, 4  ;;  %s472_s20 = smov 128   ;;  %s17_s16 = int_to_ptr.vmem [resolvable:$true] %s16_s16 }
   0x4   :  { %s473_s21 = smov 8   ;;  %s474_s22 = smov [#allocation5]  }
   0x5   :  { %22 = dma.hbm_to_vmem [thread:$0]  %s15_s14, 512, %s17_s16, [#allocation4], %s472_s20, %s472_s20, %s473_s21  }
   0x6   :  { %s30_s23 = sshll.u32 %s474_s22, 4  ;;  %s31_s23 = int_to_ptr.vmem [resolvable:$true] %s30_s23 }
   0x7   :  { %33 = dma.hbm_to_vmem [thread:$0]  %s29_s19, 256, %s31_s23, [#allocation6]  }
   0x8   :  { %467 = dma.done.wait [#allocation4], 512  }
   0x9   :  { %468 = vsyncadd [#allocation4], 4294966784 }
   0xa   :  { %469 = dma.done.wait [#allocation6], 256  }
   0xb   :  { %470 = vsyncadd [#allocation6], 4294967040  ;;  %v513_v0 = vld [vmem:[#allocation3 + $0x18] sm:$0xff]  ;;  %v515_v1 = vld [vmem:[#allocation3 + $0x8] sm:$0xff]  ;;  %s475_s0 = smov 125   ;;  %s476_s1 = smov 126  }
   0xc   :  { %215 = vrot.lane.b32.xlu0 %v513_v0, %s475_s0  ;;  %207 = vrot.lane.b32.xlu1 %v513_v0, %s476_s1  ;;  %v519_v2 = vld [vmem:[#allocation3 + $0x10] sm:$0xff]  ;;  %v521_v3 = vld [vmem:[#allocation3] sm:$0xff]  ;;  %s477_s24 = smov 127   ;;  %s478_s25 = smov 1   ;;  %v481_v4 = vmov 0.0   ;;  %vm137_vm0 = vcmask 1031168  }
   0xd   :  { %205 = vrot.lane.b32.xlu2 %v519_v2, %s476_s1  ;;  %s479_s26 = smov 2   ;;  %s480_s27 = smov 3   ;;  %75 = vst [vmem:[#allocation2 + $0xf8] sm:$0xff] %v481_v4  ;;  %vm146_vm1 = vcmask 1022976   ;;  %vm128_vm2 = vcmask 1039360   ;;  %vm108_vm3 = vcmask 1047568  }
   0xe   :  { %44 = vst [vmem:[#allocation2] sm:$0xff] %v481_v4  ;;  %s482_s28 = smov 4   ;;  %s483_s29 = smov 124   ;;  %vm117_vm4 = vcmask 1047560   ;;  %vm99_vm5 = vcmask 1047576   ;;  %vm90_vm6 = vcmask 1047584  }
   0xf   :  { %45 = vst [vmem:[#allocation2 + $0x8] sm:$0xff] %v481_v4  ;;  %v267_v52 = vld [vmem:[%s602_s2] sm:$0xff]  ;;  %v484_v53 = vmov 1   ;;  %v485_v54 = vmov 2   ;;  %vm155_vm7 = vcmask 1014784   ;;  %v486_v55 = vmov 0  }
  0x10   :  { %46 = vst [vmem:[#allocation2 + $0x10] sm:$0xff] %v481_v4  ;;  %412 = vset.pattern.permute.xlu0 %v484_v53  ;;  %413 = vset.pattern.permute.xlu1 %v485_v54  ;;  %v229_v62 = vld [vmem:[#allocation5] sm:$0xff]  ;;  %vm273_vm8 = vcmask 130048  }
  0x11   :  { %47 = vst [vmem:[#allocation2 + $0x18] sm:$0xff] %v481_v4  ;;  %411 = vset.pattern.permute.xlu2 %v486_v55 }
  0x12   :  { %48 = vst [vmem:[#allocation2 + $0x20] sm:$0xff] %v481_v4 }
  0x13   :  { %49 = vst [vmem:[#allocation2 + $0x28] sm:$0xff] %v481_v4 }
  0x14   :  { %213 = vrot.lane.b32.xlu0 %v519_v2, %s475_s0  ;;  %142 = vrot.lane.b32.xlu1 %v515_v1, %s475_s0  ;;  %50 = vst [vmem:[#allocation2 + $0x30] sm:$0xff] %v481_v4 }
  0x15   :  { %140 = vrot.lane.b32.xlu2 %v521_v3, %s475_s0  ;;  %51 = vst [vmem:[#allocation2 + $0x38] sm:$0xff] %v481_v4 }
  0x16   :  { %52 = vst [vmem:[#allocation2 + $0x40] sm:$0xff] %v481_v4 }
  0x17   :  { %53 = vst [vmem:[#allocation2 + $0x48] sm:$0xff] %v481_v4 }
  0x18   :  { %54 = vst [vmem:[#allocation2 + $0x50] sm:$0xff] %v481_v4 }
  0x19   :  { %55 = vst [vmem:[#allocation2 + $0x58] sm:$0xff] %v481_v4 }
  0x1a   :  { %56 = vst [vmem:[#allocation2 + $0x60] sm:$0xff] %v481_v4 }
  0x1b   :  { %57 = vst [vmem:[#allocation2 + $0x68] sm:$0xff] %v481_v4 }
  0x1c   :  { %199 = vrot.lane.b32.xlu0 %v513_v0, %s477_s24  ;;  %133 = vrot.lane.b32.xlu1 %v515_v1, %s476_s1  ;;  %58 = vst [vmem:[#allocation2 + $0x70] sm:$0xff] %v481_v4 }
  0x1d   :  { %197 = vrot.lane.b32.xlu2 %v519_v2, %s477_s24  ;;  %59 = vst [vmem:[#allocation2 + $0x78] sm:$0xff] %v481_v4 }
  0x1e   :  { %64 = vst [vmem:[#allocation2 + $0xa0] sm:$0xff] %v481_v4 }
  0x1f   :  { %65 = vst [vmem:[#allocation2 + $0xa8] sm:$0xff] %v481_v4 }
  0x20   :  { %66 = vst [vmem:[#allocation2 + $0xb0] sm:$0xff] %v481_v4 }
  0x21   :  { %67 = vst [vmem:[#allocation2 + $0xb8] sm:$0xff] %v481_v4 }
  0x22   :  { %68 = vst [vmem:[#allocation2 + $0xc0] sm:$0xff] %v481_v4 }
  0x23   :  { %69 = vst [vmem:[#allocation2 + $0xc8] sm:$0xff] %v481_v4 }
  0x24   :  { %131 = vrot.lane.b32.xlu0 %v521_v3, %s476_s1  ;;  %124 = vrot.lane.b32.xlu1 %v515_v1, %s477_s24  ;;  %70 = vst [vmem:[#allocation2 + $0xd0] sm:$0xff] %v481_v4 }
  0x25   :  { %122 = vrot.lane.b32.xlu2 %v521_v3, %s477_s24  ;;  %71 = vst [vmem:[#allocation2 + $0xd8] sm:$0xff] %v481_v4 }
  0x26   :  { %72 = vst [vmem:[#allocation2 + $0xe0] sm:$0xff] %v481_v4 }
  0x27   :  { %73 = vst [vmem:[#allocation2 + $0xe8] sm:$0xff] %v481_v4 }
  0x28   :  { %74 = vst [vmem:[#allocation2 + $0xf0] sm:$0xff] %v481_v4 }
  0x29   :  { %76 = vst [vmem:[#allocation2 + $0x100] sm:$0xff] %v481_v4 }
  0x2a   :  { %77 = vst [vmem:[#allocation2 + $0x108] sm:$0xff] %v481_v4 }
  0x2b   :  { %78 = vst [vmem:[#allocation2 + $0x110] sm:$0xff] %v481_v4 }
  0x2c   :  { %189 = vrot.lane.b32.xlu0 %v513_v0, %s478_s25  ;;  %187 = vrot.lane.b32.xlu1 %v519_v2, %s478_s25  ;;  %79 = vst [vmem:[#allocation2 + $0x118] sm:$0xff] %v481_v4 }
  0x2d   :  { %181 = vrot.lane.b32.xlu2 %v513_v0, %s479_s26 }
  0x34   :  { %113 = vrot.lane.b32.xlu0 %v515_v1, %s478_s25  ;;  %179 = vrot.lane.b32.xlu1 %v519_v2, %s479_s26 }
  0x35   :  { %111 = vrot.lane.b32.xlu2 %v521_v3, %s478_s25 }
  0x3c   :  { %173 = vrot.lane.b32.xlu0 %v513_v0, %s480_s27  ;;  %104 = vrot.lane.b32.xlu1 %v515_v1, %s479_s26 }
  0x3d   :  { %171 = vrot.lane.b32.xlu2 %v519_v2, %s480_s27 }
  0x44   :  { %102 = vrot.lane.b32.xlu0 %v521_v3, %s479_s26  ;;  %165 = vrot.lane.b32.xlu1 %v513_v0, %s482_s28 }
  0x45   :  { %95 = vrot.lane.b32.xlu2 %v515_v1, %s480_s27 }
  0x4c   :  { %163 = vrot.lane.b32.xlu0 %v519_v2, %s482_s28  ;;  %223 = vrot.lane.b32.xlu1 %v513_v0, %s483_s29 }
  0x4d   :  { %93 = vrot.lane.b32.xlu2 %v521_v3, %s480_s27 }
  0x54   :  { %221 = vrot.lane.b32.xlu0 %v519_v2, %s483_s29  ;;  %86 = vrot.lane.b32.xlu1 %v515_v1, %s482_s28 }
  0x55   :  { %84 = vrot.lane.b32.xlu2 %v521_v3, %s482_s28 }
  0x5c   :  { %151 = vrot.lane.b32.xlu0 %v515_v1, %s483_s29  ;;  %149 = vrot.lane.b32.xlu1 %v521_v3, %s483_s29 }
  0x5d   :  { %270 = vperm.xlu2 %411, %v267_v52  }
  0x64   :  { %370 = vperm.xlu0 %412, %v267_v52   ;;  %376 = vperm.xlu1 %413, %v267_v52  }
  0x67   :  { %v206_v5 = vpop.permute.xlu2 %205 }
  0x68   :  { %211 = vst.msk [vmem:[#allocation2 + $0xc8] sm:$0xff] %vm137_vm0, %v206_v5 }
  0x6c   :  { %414 = vset.pattern.permute.xlu0 %v485_v54 }
  0x6f   :  { %v141_v6 = vpop.permute.xlu2 %140  ;;  %v256_v22 = vld [vmem:[#allocation2 + $0xc8] sm:$0xff] }
  0x70   :  { %147 = vst.msk [vmem:[#allocation2 + $0xe0] sm:$0xff] %vm146_vm1, %v141_v6 }
  0x77   :  { %v198_v7 = vpop.permute.xlu2 %197  ;;  %v259_v19 = vld [vmem:[#allocation2 + $0xe0] sm:$0xff] }
  0x78   :  { %203 = vst.msk [vmem:[#allocation2 + $0xa8] sm:$0xff] %vm128_vm2, %v198_v7 }
  0x7e   :  { %v216_v8 = vpop.permute.xlu0 %215  ;;  %v208_v9 = vpop.permute.xlu1 %207 }
  0x7f   :  { %220 = vst.msk [vmem:[#allocation2 + $0xf8] sm:$0xff] %vm146_vm1, %v216_v8  ;;  %v123_v10 = vpop.permute.xlu2 %122  ;;  %v252_v26 = vld [vmem:[#allocation2 + $0xa8] sm:$0xff] }
  0x80   :  { %212 = vst.msk [vmem:[#allocation2 + $0xd8] sm:$0xff] %vm137_vm0, %v208_v9 }
  0x81   :  { %129 = vst.msk [vmem:[#allocation2 + $0xa0] sm:$0xff] %vm128_vm2, %v123_v10 }
  0x86   :  { %v214_v11 = vpop.permute.xlu0 %213  ;;  %v262_v12 = vld [vmem:[#allocation2 + $0xf8] sm:$0xff]  ;;  %v143_v13 = vpop.permute.xlu1 %142 }
  0x87   :  { %219 = vst.msk [vmem:[#allocation2 + $0xe8] sm:$0xff] %vm146_vm1, %v214_v11  ;;  %317 = vmatpush.msra.mxu2 %v262_v12  ;;  %v182_v14 = vpop.permute.xlu2 %181  ;;  %v258_v21 = vld [vmem:[#allocation2 + $0xd8] sm:$0xff] }
  0x88   :  { %148 = vst.msk [vmem:[#allocation2 + $0xf0] sm:$0xff] %vm146_vm1, %v143_v13  ;;  %v251_v34 = vld [vmem:[#allocation2 + $0xa0] sm:$0xff] }
  0x89   :  { %186 = vst.msk [vmem:[#allocation2 + $0x58] sm:$0xff] %vm108_vm3, %v182_v14 }
  0x8e   :  { %v200_v15 = vpop.permute.xlu0 %199  ;;  %v260_v16 = vld [vmem:[#allocation2 + $0xe8] sm:$0xff]  ;;  %v134_v17 = vpop.permute.xlu1 %133 }
  0x8f   :  { %204 = vst.msk [vmem:[#allocation2 + $0xb8] sm:$0xff] %vm128_vm2, %v200_v15  ;;  %318 = vmatpush.msra.mxu2 %v260_v16  ;;  %v261_v18 = vld [vmem:[#allocation2 + $0xf0] sm:$0xff]  ;;  %v112_v20 = vpop.permute.xlu2 %111 }
  0x90   :  { %139 = vst.msk [vmem:[#allocation2 + $0xd0] sm:$0xff] %vm137_vm0, %v134_v17  ;;  %277 = vmatpush.msra.mxu0 %v261_v18  ;;  %v242_v40 = vld [vmem:[#allocation2 + $0x58] sm:$0xff] }
  0x91   :  { %319 = vmatpush.msra.mxu2 %v258_v21  ;;  %118 = vst.msk [vmem:[#allocation2 + $0x60] sm:$0xff] %vm117_vm4, %v112_v20 }
  0x92   :  { %278 = vmatpush.msra.mxu0 %v259_v19 }
  0x93   :  { %320 = vmatpush.msra.mxu2 %v256_v22 }
  0x96   :  { %v132_v23 = vpop.permute.xlu0 %131  ;;  %v254_v24 = vld [vmem:[#allocation2 + $0xb8] sm:$0xff]  ;;  %v125_v25 = vpop.permute.xlu1 %124 }
  0x97   :  { %138 = vst.msk [vmem:[#allocation2 + $0xc0] sm:$0xff] %vm137_vm0, %v132_v23  ;;  %321 = vmatpush.msra.mxu2 %v254_v24  ;;  %v257_v27 = vld [vmem:[#allocation2 + $0xd0] sm:$0xff]  ;;  %v172_v28 = vpop.permute.xlu2 %171 }
  0x98   :  { %130 = vst.msk [vmem:[#allocation2 + $0xb0] sm:$0xff] %vm128_vm2, %v125_v25  ;;  %279 = vmatpush.msra.mxu0 %v257_v27  ;;  %v243_v44 = vld [vmem:[#allocation2 + $0x60] sm:$0xff] }
  0x99   :  { %322 = vmatpush.msra.mxu2 %v252_v26  ;;  %177 = vst.msk [vmem:[#allocation2 + $0x28] sm:$0xff] %vm99_vm5, %v172_v28 }
  0x9b   :  { %323 = vmatpush.msra.mxu2 %v513_v0 }
  0x9d   :  { %324 = vmatpush.msra.mxu2 %v519_v2 }
  0x9e   :  { %v190_v29 = vpop.permute.xlu0 %189  ;;  %v255_v30 = vld [vmem:[#allocation2 + $0xc0] sm:$0xff]  ;;  %v188_v31 = vpop.permute.xlu1 %187 }
  0x9f   :  { %194 = vst.msk [vmem:[#allocation2 + $0x78] sm:$0xff] %vm117_vm4, %v190_v29  ;;  %280 = vmatpush.msra.mxu0 %v255_v30  ;;  %v253_v32 = vld [vmem:[#allocation2 + $0xb0] sm:$0xff]  ;;  %v96_v33 = vpop.permute.xlu2 %95 }
  0xa0   :  { %193 = vst.msk [vmem:[#allocation2 + $0x68] sm:$0xff] %vm117_vm4, %v188_v31  ;;  %v236_v50 = vld [vmem:[#allocation2 + $0x28] sm:$0xff] }
  0xa1   :  { %281 = vmatpush.msra.mxu0 %v253_v32  ;;  %101 = vst.msk [vmem:[#allocation2 + $0x30] sm:$0xff] %vm99_vm5, %v96_v33 }
  0xa3   :  { %282 = vmatpush.msra.mxu0 %v251_v34 }
  0xa5   :  { %283 = vmatpush.msra.mxu0 %v515_v1 }
  0xa6   :  { %v114_v35 = vpop.permute.xlu0 %113  ;;  %v246_v36 = vld [vmem:[#allocation2 + $0x78] sm:$0xff]  ;;  %v180_v37 = vpop.permute.xlu1 %179 }
  0xa7   :  { %119 = vst.msk [vmem:[#allocation2 + $0x70] sm:$0xff] %vm117_vm4, %v114_v35  ;;  %325 = vmatpush.msra.mxu2 %v246_v36  ;;  %v244_v38 = vld [vmem:[#allocation2 + $0x68] sm:$0xff]  ;;  %284 = vmatpush.msra.mxu0 %v521_v3  ;;  %v94_v39 = vpop.permute.xlu2 %93 }
  0xa8   :  { %185 = vst.msk [vmem:[#allocation2 + $0x48] sm:$0xff] %vm108_vm3, %v180_v37  ;;  %v237_v59 = vld [vmem:[#allocation2 + $0x30] sm:$0xff]  ;;  %v230_v3 = vld [vmem:[#allocation5 + $0x8] sm:$0xff] }
  0xa9   :  { %326 = vmatpush.msra.mxu2 %v244_v38  ;;  %100 = vst.msk [vmem:[#allocation2 + $0x20] sm:$0xff] %vm99_vm5, %v94_v39 }
  0xab   :  { %327 = vmatpush.msra.mxu2 %v242_v40 }
  0xae   :  { %v174_v41 = vpop.permute.xlu0 %173  ;;  %v245_v42 = vld [vmem:[#allocation2 + $0x70] sm:$0xff]  ;;  %v105_v43 = vpop.permute.xlu1 %104 }
  0xaf   :  { %178 = vst.msk [vmem:[#allocation2 + $0x38] sm:$0xff] %vm99_vm5, %v174_v41  ;;  %285 = vmatpush.msra.mxu0 %v245_v42  ;;  %v240_v45 = vld [vmem:[#allocation2 + $0x48] sm:$0xff]  ;;  %v85_v46 = vpop.permute.xlu2 %84 }
  0xb0   :  { %110 = vst.msk [vmem:[#allocation2 + $0x50] sm:$0xff] %vm108_vm3, %v105_v43  ;;  %328 = vmatpush.msra.mxu2 %v240_v45  ;;  %v235_v61 = vld [vmem:[#allocation2 + $0x20] sm:$0xff] }
  0xb1   :  { %286 = vmatpush.msra.mxu0 %v243_v44  ;;  %91 = vst.msk [vmem:[#allocation2] sm:$0xff] %vm90_vm6, %v85_v46 }
  0xb6   :  { %v103_v47 = vpop.permute.xlu0 %102  ;;  %v238_v48 = vld [vmem:[#allocation2 + $0x38] sm:$0xff]  ;;  %v166_v49 = vpop.permute.xlu1 %165 }
  0xb7   :  { %109 = vst.msk [vmem:[#allocation2 + $0x40] sm:$0xff] %vm108_vm3, %v103_v47  ;;  %329 = vmatpush.msra.mxu2 %v238_v48  ;;  %v241_v51 = vld [vmem:[#allocation2 + $0x50] sm:$0xff]  ;;  %v271_v11 = vpop.permute.xlu2 %270 }
  0xb8   :  { %170 = vst.msk [vmem:[#allocation2 + $0x18] sm:$0xff] %vm90_vm6, %v166_v49  ;;  %287 = vmatpush.msra.mxu0 %v241_v51  ;;  %v231_v8 = vld [vmem:[#allocation2] sm:$0xff] }
  0xb9   :  { %330 = vmatpush.msra.mxu2 %v236_v50 }
  0xbe   :  { %v164_v56 = vpop.permute.xlu0 %163  ;;  %v239_v57 = vld [vmem:[#allocation2 + $0x40] sm:$0xff]  ;;  %v224_v58 = vpop.permute.xlu1 %223 }
  0xbf   :  { %169 = vst.msk [vmem:[#allocation2 + $0x8] sm:$0xff] %vm90_vm6, %v164_v56  ;;  %288 = vmatpush.msra.mxu0 %v239_v57  ;;  %v234_v60 = vld [vmem:[#allocation2 + $0x18] sm:$0xff] }
  0xc0   :  { %228 = vst.msk [vmem:[#allocation2 + $0x118] sm:$0xff] %vm155_vm7, %v224_v58  ;;  %331 = vmatpush.msra.mxu2 %v234_v60 }
  0xc1   :  { %289 = vmatpush.msra.mxu0 %v237_v59 }
  0xc3   :  { %290 = vmatpush.msra.mxu0 %v235_v61 }
  0xc6   :  { %v222_v63 = vpop.permute.xlu0 %221  ;;  %v232_v0 = vld [vmem:[#allocation2 + $0x8] sm:$0xff]  ;;  %v87_v1 = vpop.permute.xlu1 %86 }
  0xc7   :  { %227 = vst.msk [vmem:[#allocation2 + $0x108] sm:$0xff] %vm155_vm7, %v222_v63  ;;  %332 = vmatpush.msra.mxu2 %v232_v0  ;;  %v266_v2 = vld [vmem:[#allocation2 + $0x118] sm:$0xff] }
  0xc8   :  { %92 = vst.msk [vmem:[#allocation2 + $0x10] sm:$0xff] %vm90_vm6, %v87_v1  ;;  %351 = vmatpush.msra.mxu3 %v266_v2  ;;  %333 = vmatmul.f32.vlgmr.msra.gmra.mxu2 %v229_v62 }
  0xce   :  { %v152_v4 = vpop.permute.xlu0 %151  ;;  %v264_v5 = vld [vmem:[#allocation2 + $0x108] sm:$0xff]  ;;  %v150_v6 = vpop.permute.xlu1 %149 }
  0xcf   :  { %157 = vst.msk [vmem:[#allocation2 + $0x110] sm:$0xff] %vm155_vm7, %v152_v4  ;;  %352 = vmatpush.msra.mxu3 %v264_v5  ;;  %v233_v7 = vld [vmem:[#allocation2 + $0x10] sm:$0xff] }
  0xd0   :  { %156 = vst.msk [vmem:[#allocation2 + $0x100] sm:$0xff] %vm155_vm7, %v150_v6  ;;  %391 = vmatmul.msk.f32.vlgmr.msra.gmra.mxu3 %vm273_vm8, %v230_v3  ;;  %291 = vmatpush.msra.mxu0 %v233_v7 }
  0xd2   :  { %292 = vmatpush.msra.mxu0 %v231_v8 }
  0xd3   :  { %293 = vmatmul.f32.vlgmr.msra.gmra.mxu0 %v229_v62 }
  0xd6   :  { %v265_v9 = vld [vmem:[#allocation2 + $0x110] sm:$0xff]  ;;  %v371_v25 = vpop.permute.xlu0 %370  ;;  %v377_v28 = vpop.permute.xlu1 %376 }
  0xd7   :  { %311 = vmatpush.msra.mxu1 %v265_v9  ;;  %v263_v10 = vld [vmem:[#allocation2 + $0x100] sm:$0xff] }
  0xd9   :  { %312 = vmatpush.msra.mxu1 %v263_v10 }
  0xda   :  { %390 = vmatmul.msk.f32.vlgmr.msra.gmra.mxu1 %vm273_vm8, %v230_v3 }
 0x14b   :  { %v334_v12 = vpop.f32.mrf.mxu2 }
 0x14c   :  { %v335_v13 = vadd.f32 %v334_v12, %v271_v11 }
 0x150   :  { %v294_v14 = vpop.f32.mrf.mxu0 }
 0x151   :  { %v295_v17 = vadd.f32 %v294_v14, %v271_v11 }
 0x153   :  { %v354_v15 = vpop.f32.mrf.mxu3 }
 0x154   :  { %v355_v16 = vadd.f32 %v354_v15, %v335_v13 }
 0x156   :  { %v360_v18 = vmin.f32 %v355_v16, 0.0  ;;  %vm358_vm9 = vcmp.gt.f32.partialorder %v355_v16, 0.0 }
 0x157   :  { %v314_v19 = vpop.f32.mrf.mxu1 }
 0x158   :  { %v363_v20 = vmul.f32 1.442695, %v360_v18  ;;  %v315_v21 = vadd.f32 %v314_v19, %v295_v17 }
 0x15a   :  { %415 = vpow2.f32 %v363_v20  ;;  %v359_v22 = vmin.f32 %v315_v21, 0.0  ;;  %vm357_vm10 = vcmp.gt.f32.partialorder %v315_v21, 0.0 }
 0x15c   :  { %v361_v23 = vmul.f32 1.442695, %v359_v22 }
 0x15e   :  { %417 = vpow2.f32 %v361_v23 }
 0x160   :  { %v416_v24 = vpop.eup %415 }
 0x161   :  { %v393_v26 = vadd.f32 -1.0, %v416_v24 }
 0x163   :  { %v368_v27 = vsel %vm358_vm9, %v355_v16, %v393_v26 }
 0x164   :  { %v418_v29 = vpop.eup %417  ;;  %v374_v30 = vmul.f32 %v371_v25, %v368_v27 }
 0x165   :  { %v392_v31 = vadd.f32 -1.0, %v418_v29 }
 0x166   :  { %v380_v32 = vadd.f32 %v377_v28, %v374_v30 }
 0x167   :  { %v367_v33 = vsel %vm357_vm10, %v315_v21, %v392_v31 }
 0x168   :  { %v373_v34 = vmul.f32 %v371_v25, %v367_v33  ;;  %394 = vst [vmem:[%s603_s3 + $0x8] sm:$0x3f] %v380_v32 }
 0x16a   :  { %v379_v35 = vadd.f32 %v377_v28, %v373_v34 }
 0x16c   :  { %381 = vst [vmem:[%s603_s3] sm:$0x3f] %v379_v35 }
 0x16d   :  { %388 = vsyncpa [#allocation4], 1 }
 0x16e   :  { %389 = vsyncpa [#allocation6], 1 }

</bundles_post_ra>
